<compile_context>
chip_gen: v7x
topology: tpu7x:2x2x1
jax: 0.10.0
libtpu: 0.0.40
codegen_flags: <defaults>
</compile_context>

<pallas_src>
import math

import jax
import jax.numpy as jnp
from jax.experimental import pallas as pl
from jax.experimental.pallas import tpu as pltpu


def _fused_kernel(x_ref, top_ref, bot_ref, rb_ref, w1x_ref, wp_ref, bp_ref,
                  wr_ref, o_ref, pad_ref):
    # x_ref  : (1, TH*W, C)   tokens of this row tile
    # top_ref: (1, W, C)      one halo row above (clamped at image top)
    # bot_ref: (1, W, C)      one halo row below (clamped at image bottom)
    # rb_ref : (1, 1, C)      per-batch bias = readout @ w1_r + b1
    # w1x_ref: (C, C)         token half of mlp.fc1 weight
    # wp_ref : (C, Cout)      1x1 project weight
    # bp_ref : (1, Cout)      project bias
    # wr_ref : (9*Cout, F)    3x3 resample weight, (ky,kx,cin)-major (im2col layout)
    # o_ref  : (1, TH*W, F)   output rows of this tile (NHWC rows, flattened over H,W)
    # pad_ref: (TH+2, W+2, Cout) f32 VMEM scratch = zero-padded conv input
    TH = pad_ref.shape[0] - 2
    W = pad_ref.shape[1] - 2

    r = pl.program_id(1)
    last_r = pl.num_programs(1) - 1

    # ---- fused MLP (concat-free) + exact-erf GELU + 1x1 project, on tile + halo rows ----
    x_all = jnp.concatenate([top_ref[0], x_ref[0], bot_ref[0]], axis=0)  # ((TH+2)*W, C)
    h = jnp.dot(x_all, w1x_ref[...], preferred_element_type=jnp.float32)
    h = h + rb_ref[0]                                    # readout half of fc1 + b1 (per batch)
    h = 0.5 * h * (1.0 + jax.lax.erf(h * (1.0 / math.sqrt(2.0))))   # torch.nn.GELU() default
    proj = jnp.dot(h, wp_ref[...], preferred_element_type=jnp.float32) + bp_ref[...]

    # zero halo rows that fall outside the image (top of first tile / bottom of last tile)
    proj = proj.reshape(TH + 2, W, pad_ref.shape[2])
    ridx = jax.lax.broadcasted_iota(jnp.int32, (TH + 2, 1, 1), 0)
    keep = jnp.logical_and(jnp.logical_or(ridx != 0, r != 0),
                           jnp.logical_or(ridx != TH + 1, r != last_r))
    proj = jnp.where(keep, proj, 0.0)

    # ---- zero-padded conv input lives only in VMEM (no jnp.pad round-trip via HBM) ----
    pad_ref[...] = jnp.zeros_like(pad_ref)
    pad_ref[:, 1:W + 1, :] = proj        # columns 0 and W+1 stay zero (width padding)

    # ---- 3x3 conv (pad=1, no bias) as ONE im2col matmul: (TH*W, 9*Cout) x (9*Cout, F) ----
    taps = [pad_ref[ky:ky + TH, kx:kx + W, :] for ky in range(3) for kx in range(3)]
    cols = jnp.concatenate(taps, axis=-1).reshape(TH * W, 9 * pad_ref.shape[2])
    conv = jnp.dot(cols, wr_ref[...], preferred_element_type=jnp.float32)
    o_ref[0] = conv.astype(o_ref.dtype)


def reassemble_block(tokens, readout, params, h_patches, w_patches, row_tile=None):
    """tokens: (B, N, C)   readout: (B, C)   returns (B, features, H, W) NCHW."""
    B, N, C = tokens.shape
    H, W = h_patches, w_patches
    assert N == H * W

    w1, b1 = params["w1"], params["b1"]          # (2C, C), (C,)
    wp, bp = params["wp"], params["bp"]          # (C, Cout), (Cout,)
    wr = params["wr"]                            # (3, 3, Cout, F)  HWIO
    Cout = wp.shape[1]
    F = wr.shape[-1]

    # Row tile (multiple of 8 sublanes, divides H).  Small here; 16-32 for real DPT sizes.
    if row_tile is None:
        row_tile = 8 if H % 8 == 0 else H
    TH = row_tile
    assert H % TH == 0
    R = H // TH

    # Concat-free MLP: split fc1 into token / readout halves; fold the readout half
    # plus b1 into a per-batch bias computed ONCE here (tiny B x C matmul).
    w1x, w1r = w1[:C], w1[C:]
    r_bias = (jnp.dot(readout, w1r) + b1[None, :]).reshape(B, 1, C).astype(jnp.float32)

    wr2 = wr.reshape(9 * Cout, F)     # (ky,kx,cin)-major, matches the in-kernel im2col order
    bp2 = bp.reshape(1, Cout)

    cost = pl.CostEstimate(
        flops=2 * B * (H + 2 * R) * W * C * (C + Cout) + 2 * B * N * 9 * Cout * F,
        transcendentals=B * (H + 2 * R) * W * C,
        bytes_accessed=4 * (B * (H + 2 * R) * W * C + B * N * F + B * C
                            + C * C + C * Cout + Cout + 9 * Cout * F),
    )

    y = pl.pallas_call(
        _fused_kernel,
        out_shape=jax.ShapeDtypeStruct((B, N, F), tokens.dtype),
        grid_spec=pltpu.PrefetchScalarGridSpec(
            num_scalar_prefetch=0,
            grid=(B, R),
            in_specs=[
                # main row tile (TH image rows == TH*W contiguous tokens)
                pl.BlockSpec((1, TH * W, C), lambda b, r: (b, r, 0)),
                # halo rows: one image row (block size W along N), clamped at borders;
                # the kernel masks the clamped rows to zero.
                pl.BlockSpec((1, W, C), lambda b, r: (b, jnp.maximum(r * TH - 1, 0), 0)),
                pl.BlockSpec((1, W, C), lambda b, r: (b, jnp.minimum(r * TH + TH, H - 1), 0)),
                # per-batch readout bias
                pl.BlockSpec((1, 1, C), lambda b, r: (b, 0, 0)),
                # weights: resident (constant index maps)
                pl.BlockSpec((C, C), lambda b, r: (0, 0)),
                pl.BlockSpec((C, Cout), lambda b, r: (0, 0)),
                pl.BlockSpec((1, Cout), lambda b, r: (0, 0)),
                pl.BlockSpec((9 * Cout, F), lambda b, r: (0, 0)),
            ],
            out_specs=pl.BlockSpec((1, TH * W, F), lambda b, r: (b, r, 0)),
            scratch_shapes=[pltpu.VMEM((TH + 2, W + 2, Cout), jnp.float32)],
        ),
        compiler_params=pltpu.CompilerParams(
            dimension_semantics=("parallel", "parallel"),
            vmem_limit_bytes=48 * 1024 * 1024,
        ),
        cost_estimate=cost,
    )(tokens, tokens, tokens, r_bias, w1x, wp, bp2, wr2)

    # TODO(synk): resize_layer is a constructor-injected module (e.g. ConvTranspose2d /
    # interpolate); Identity is assumed here.

    # (B, N, F) has the same memory layout as NHWC (B, H, W, F); return NCHW like PyTorch.
    return jnp.transpose(y.reshape(B, H, W, F), (0, 3, 1, 2))


def _reference(tokens, readout, params, H, W):
    """Pure-JAX reference mirroring the PyTorch module (resize = Identity)."""
    B, N, C = tokens.shape
    r = jnp.broadcast_to(readout[:, None, :], tokens.shape)
    xcat = jnp.concatenate([tokens, r], axis=-1)
    h = jnp.dot(xcat, params["w1"], precision=jax.lax.Precision.HIGHEST) + params["b1"]
    h = 0.5 * h * (1.0 + jax.lax.erf(h * (1.0 / math.sqrt(2.0))))
    y = jnp.dot(h, params["wp"], precision=jax.lax.Precision.HIGHEST) + params["bp"]
    x = y.reshape(B, H, W, -1)                                   # NHWC
    out = jax.lax.conv_general_dilated(
        x, params["wr"], window_strides=(1, 1), padding="SAME",
        dimension_numbers=("NHWC", "HWIO", "NHWC"),
        precision=jax.lax.Precision.HIGHEST)
    return jnp.transpose(out, (0, 3, 1, 2))                       # NCHW


if __name__ == "__main__":
    key = jax.random.PRNGKey(0)
    # module hyper-params: features=8, in_channels=16, out_channels=8
    B, C, Cout, F = 2, 16, 8, 8
    h_patches, w_patches = 16, 8          # two row tiles -> exercises the halo path
    N = h_patches * w_patches

    k = jax.random.split(key, 8)
    tokens = jax.random.normal(k[0], (B, N, C), jnp.float32)    # x[0]
    readout = jax.random.normal(k[1], (B, C), jnp.float32)      # x[1]

    params = {
        "w1": 0.1 * jax.random.normal(k[2], (2 * C, C), jnp.float32),       # mlp.fc1
        "b1": 0.1 * jax.random.normal(k[3], (C,), jnp.float32),
        "wp": 0.1 * jax.random.normal(k[4], (C, Cout), jnp.float32),        # project (1x1)
        "bp": 0.1 * jax.random.normal(k[5], (Cout,), jnp.float32),
        "wr": 0.1 * jax.random.normal(k[6], (3, 3, Cout, F), jnp.float32),  # resample (3x3, HWIO)
    }

    out = reassemble_block(tokens, readout, params, h_patches, w_patches)
    jax.block_until_ready(out)
    assert out.shape == (B, F, h_patches, w_patches)

    ref = _reference(tokens, readout, params, h_patches, w_patches)
    err = float(jnp.max(jnp.abs(out - ref)))
    assert err < 5e-3, f"max abs error vs reference: {err}"

    print("KERNEL_OK")
</pallas_src>

<mosaic_0001>
module attributes {stable_mosaic.version = 11 : i64} {
  func.func @_fused_kernel(%arg0: i32, %arg1: i32, %arg2: memref<1x64x16xf32, #tpu.memory_space<vmem>>, %arg3: memref<1x8x16xf32, #tpu.memory_space<vmem>>, %arg4: memref<1x8x16xf32, #tpu.memory_space<vmem>>, %arg5: memref<1x1x16xf32, #tpu.memory_space<vmem>>, %arg6: memref<16x16xf32, #tpu.memory_space<vmem>>, %arg7: memref<16x8xf32, #tpu.memory_space<vmem>>, %arg8: memref<1x8xf32, #tpu.memory_space<vmem>>, %arg9: memref<72x8xf32, #tpu.memory_space<vmem>>, %arg10: memref<1x64x8xf32, #tpu.memory_space<vmem>>, %arg11: memref<10x10x8xf32, #tpu.memory_space<vmem>>) attributes {dimension_semantics = [#tpu.dimension_semantics<parallel>, #tpu.dimension_semantics<parallel>], iteration_bounds = array<i64: 2, 2>, scalar_prefetch = 0 : i64, scratch_operands = 1 : i64, tpu.core_type = #tpu.core_type<tc>, window_params = [{transform_indices = @transform_0, window_bounds = array<i64: 1, 64, 16>}, {transform_indices = @transform_1, window_bounds = array<i64: 1, 8, 16>}, {transform_indices = @transform_2, window_bounds = array<i64: 1, 8, 16>}, {transform_indices = @transform_3, window_bounds = array<i64: 1, 1, 16>}, {pipeline_mode = #tpu.pipeline_mode<synchronous>, transform_indices = @transform_4, window_bounds = array<i64: 16, 16>}, {pipeline_mode = #tpu.pipeline_mode<synchronous>, transform_indices = @transform_5, window_bounds = array<i64: 16, 8>}, {pipeline_mode = #tpu.pipeline_mode<synchronous>, transform_indices = @transform_6, window_bounds = array<i64: 1, 8>}, {pipeline_mode = #tpu.pipeline_mode<synchronous>, transform_indices = @transform_7, window_bounds = array<i64: 72, 8>}, {transform_indices = @transform_8, window_bounds = array<i64: 1, 64, 8>}]} {
    %c0 = arith.constant 0 : index
    %c0_0 = arith.constant 0 : index
    %c0_1 = arith.constant 0 : index
    %0 = vector.load %arg3[%c0, %c0_0, %c0_1] : memref<1x8x16xf32, #tpu.memory_space<vmem>>, vector<1x8x16xf32>
    %1 = vector.shape_cast %0 : vector<1x8x16xf32> to vector<8x16xf32>
    %c0_2 = arith.constant 0 : index
    %c0_3 = arith.constant 0 : index
    %c0_4 = arith.constant 0 : index
    %2 = vector.load %arg2[%c0_2, %c0_3, %c0_4] : memref<1x64x16xf32, #tpu.memory_space<vmem>>, vector<1x64x16xf32>
    %3 = vector.shape_cast %2 : vector<1x64x16xf32> to vector<64x16xf32>
    %c0_5 = arith.constant 0 : index
    %c0_6 = arith.constant 0 : index
    %c0_7 = arith.constant 0 : index
    %4 = vector.load %arg4[%c0_5, %c0_6, %c0_7] : memref<1x8x16xf32, #tpu.memory_space<vmem>>, vector<1x8x16xf32>
    %5 = vector.shape_cast %4 : vector<1x8x16xf32> to vector<8x16xf32>
    %6 = tpu.concatenate %1, %3, %5 in 0 : vector<8x16xf32>, vector<64x16xf32>, vector<8x16xf32> -> vector<80x16xf32>
    %c0_8 = arith.constant 0 : index
    %c0_9 = arith.constant 0 : index
    %7 = vector.load %arg6[%c0_8, %c0_9] : memref<16x16xf32, #tpu.memory_space<vmem>>, vector<16x16xf32>
    %cst = arith.constant dense<0.000000e+00> : vector<80x16xf32>
    %8 = tpu.matmul %6, %7, %cst {dimension_numbers = #tpu.dot_dimension_numbers<[1], [0], [0], [1], [0, 0, 1, 1], [], []>} : vector<80x16xf32>, vector<16x16xf32>, vector<80x16xf32> -> vector<80x16xf32>
    %c0_10 = arith.constant 0 : index
    %c0_11 = arith.constant 0 : index
    %c0_12 = arith.constant 0 : index
    %9 = vector.load %arg5[%c0_10, %c0_11, %c0_12] : memref<1x1x16xf32, #tpu.memory_space<vmem>>, vector<1x1x16xf32>
    %10 = vector.shape_cast %9 : vector<1x1x16xf32> to vector<1x16xf32>
    %11 = vector.broadcast %10 : vector<1x16xf32> to vector<80x16xf32>
    %12 = arith.addf %8, %11 : vector<80x16xf32>
    %cst_13 = arith.constant 5.000000e-01 : f32
    %13 = vector.broadcast %cst_13 : f32 to vector<80x16xf32>
    %14 = arith.mulf %13, %12 : vector<80x16xf32>
    %cst_14 = arith.constant 0.707106769 : f32
    %15 = vector.broadcast %cst_14 : f32 to vector<80x16xf32>
    %16 = arith.mulf %12, %15 : vector<80x16xf32>
    %17 = math.erf %16 : vector<80x16xf32>
    %cst_15 = arith.constant 1.000000e+00 : f32
    %18 = vector.broadcast %cst_15 : f32 to vector<80x16xf32>
    %19 = arith.addf %18, %17 : vector<80x16xf32>
    %20 = arith.mulf %14, %19 : vector<80x16xf32>
    %c0_16 = arith.constant 0 : index
    %c0_17 = arith.constant 0 : index
    %21 = vector.load %arg7[%c0_16, %c0_17] : memref<16x8xf32, #tpu.memory_space<vmem>>, vector<16x8xf32>
    %cst_18 = arith.constant dense<0.000000e+00> : vector<80x8xf32>
    %22 = tpu.matmul %20, %21, %cst_18 {dimension_numbers = #tpu.dot_dimension_numbers<[1], [0], [0], [1], [0, 0, 1, 1], [], []>} : vector<80x16xf32>, vector<16x8xf32>, vector<80x8xf32> -> vector<80x8xf32>
    %c0_19 = arith.constant 0 : index
    %c0_20 = arith.constant 0 : index
    %23 = vector.load %arg8[%c0_19, %c0_20] : memref<1x8xf32, #tpu.memory_space<vmem>>, vector<1x8xf32>
    %24 = vector.broadcast %23 : vector<1x8xf32> to vector<80x8xf32>
    %25 = arith.addf %22, %24 : vector<80x8xf32>
    %26 = vector.shape_cast %25 : vector<80x8xf32> to vector<10x8x8xf32>
    %27 = tpu.iota {dimensions = array<i32: 0>} : vector<10x1x1xi32>
    %c0_i32 = arith.constant 0 : i32
    %28 = vector.broadcast %c0_i32 : i32 to vector<10x1x1xi32>
    %29 = arith.cmpi ne, %27, %28 : vector<10x1x1xi32>
    %c0_i32_21 = arith.constant 0 : i32
    %30 = arith.cmpi ne, %arg1, %c0_i32_21 : i32
    %31 = vector.broadcast %30 : i1 to vector<10x1x1xi1>
    %32 = arith.ori %29, %31 : vector<10x1x1xi1>
    %c9_i32 = arith.constant 9 : i32
    %33 = vector.broadcast %c9_i32 : i32 to vector<10x1x1xi32>
    %34 = arith.cmpi ne, %27, %33 : vector<10x1x1xi32>
    %c1_i32 = arith.constant 1 : i32
    %35 = arith.cmpi ne, %arg1, %c1_i32 : i32
    %36 = vector.broadcast %35 : i1 to vector<10x1x1xi1>
    %37 = arith.ori %34, %36 : vector<10x1x1xi1>
    %38 = arith.andi %32, %37 : vector<10x1x1xi1>
    %cst_22 = arith.constant 0.000000e+00 : f32
    %39 = vector.shape_cast %38 : vector<10x1x1xi1> to vector<10x1x1xi1>
    %40 = vector.broadcast %39 : vector<10x1x1xi1> to vector<10x8x8xi1>
    %41 = vector.broadcast %cst_22 : f32 to vector<10x8x8xf32>
    %42 = arith.select %40, %26, %41 : vector<10x8x8xi1>, vector<10x8x8xf32>
    %cst_23 = arith.constant 0.000000e+00 : f32
    %43 = vector.broadcast %cst_23 : f32 to vector<10x10x8xf32>
    %c0_24 = arith.constant 0 : index
    %c0_25 = arith.constant 0 : index
    %c0_26 = arith.constant 0 : index
    %44 = vector.load %arg11[%c0_24, %c0_25, %c0_26] : memref<10x10x8xf32, #tpu.memory_space<vmem>>, vector<10x10x8xf32>
    tpu.vector_store %arg11[%c0_24, %c0_25, %c0_26], %43 {strides = array<i32>} : memref<10x10x8xf32, #tpu.memory_space<vmem>>, vector<10x10x8xf32>,
    %c0_27 = arith.constant 0 : index
    %c1 = arith.constant 1 : index
    %c0_28 = arith.constant 0 : index
    %45 = vector.load %arg11[%c0_27, %c1, %c0_28] : memref<10x10x8xf32, #tpu.memory_space<vmem>>, vector<10x8x8xf32>
    tpu.vector_store %arg11[%c0_27, %c1, %c0_28], %42 {strides = array<i32>} : memref<10x10x8xf32, #tpu.memory_space<vmem>>, vector<10x8x8xf32>,
    %c0_29 = arith.constant 0 : index
    %c0_30 = arith.constant 0 : index
    %c0_31 = arith.constant 0 : index
    %46 = vector.load %arg11[%c0_29, %c0_30, %c0_31] : memref<10x10x8xf32, #tpu.memory_space<vmem>>, vector<8x8x8xf32>
    %c0_32 = arith.constant 0 : index
    %c1_33 = arith.constant 1 : index
    %c0_34 = arith.constant 0 : index
    %47 = vector.load %arg11[%c0_32, %c1_33, %c0_34] : memref<10x10x8xf32, #tpu.memory_space<vmem>>, vector<8x8x8xf32>
    %c0_35 = arith.constant 0 : index
    %c2 = arith.constant 2 : index
    %c0_36 = arith.constant 0 : index
    %48 = vector.load %arg11[%c0_35, %c2, %c0_36] : memref<10x10x8xf32, #tpu.memory_space<vmem>>, vector<8x8x8xf32>
    %c1_37 = arith.constant 1 : index
    %c0_38 = arith.constant 0 : index
    %c0_39 = arith.constant 0 : index
    %49 = vector.load %arg11[%c1_37, %c0_38, %c0_39] : memref<10x10x8xf32, #tpu.memory_space<vmem>>, vector<8x8x8xf32>
    %c1_40 = arith.constant 1 : index
    %c1_41 = arith.constant 1 : index
    %c0_42 = arith.constant 0 : index
    %50 = vector.load %arg11[%c1_40, %c1_41, %c0_42] : memref<10x10x8xf32, #tpu.memory_space<vmem>>, vector<8x8x8xf32>
    %c1_43 = arith.constant 1 : index
    %c2_44 = arith.constant 2 : index
    %c0_45 = arith.constant 0 : index
    %51 = vector.load %arg11[%c1_43, %c2_44, %c0_45] : memref<10x10x8xf32, #tpu.memory_space<vmem>>, vector<8x8x8xf32>
    %c2_46 = arith.constant 2 : index
    %c0_47 = arith.constant 0 : index
    %c0_48 = arith.constant 0 : index
    %52 = vector.load %arg11[%c2_46, %c0_47, %c0_48] : memref<10x10x8xf32, #tpu.memory_space<vmem>>, vector<8x8x8xf32>
    %c2_49 = arith.constant 2 : index
    %c1_50 = arith.constant 1 : index
    %c0_51 = arith.constant 0 : index
    %53 = vector.load %arg11[%c2_49, %c1_50, %c0_51] : memref<10x10x8xf32, #tpu.memory_space<vmem>>, vector<8x8x8xf32>
    %c2_52 = arith.constant 2 : index
    %c2_53 = arith.constant 2 : index
    %c0_54 = arith.constant 0 : index
    %54 = vector.load %arg11[%c2_52, %c2_53, %c0_54] : memref<10x10x8xf32, #tpu.memory_space<vmem>>, vector<8x8x8xf32>
    %55 = tpu.concatenate %46, %47, %48, %49, %50, %51, %52, %53, %54 in 2 : vector<8x8x8xf32>, vector<8x8x8xf32>, vector<8x8x8xf32>, vector<8x8x8xf32>, vector<8x8x8xf32>, vector<8x8x8xf32>, vector<8x8x8xf32>, vector<8x8x8xf32>, vector<8x8x8xf32> -> vector<8x8x72xf32>
    %56 = vector.shape_cast %55 : vector<8x8x72xf32> to vector<64x72xf32>
    %c0_55 = arith.constant 0 : index
    %c0_56 = arith.constant 0 : index
    %57 = vector.load %arg9[%c0_55, %c0_56] : memref<72x8xf32, #tpu.memory_space<vmem>>, vector<72x8xf32>
    %cst_57 = arith.constant dense<0.000000e+00> : vector<64x8xf32>
    %58 = tpu.matmul %56, %57, %cst_57 {dimension_numbers = #tpu.dot_dimension_numbers<[1], [0], [0], [1], [0, 0, 1, 1], [], []>} : vector<64x72xf32>, vector<72x8xf32>, vector<64x8xf32> -> vector<64x8xf32>
    %c0_58 = arith.constant 0 : index
    %c0_59 = arith.constant 0 : index
    %c0_60 = arith.constant 0 : index
    %59 = vector.load %arg10[%c0_58, %c0_59, %c0_60] : memref<1x64x8xf32, #tpu.memory_space<vmem>>, vector<1x64x8xf32>
    %60 = vector.shape_cast %59 : vector<1x64x8xf32> to vector<64x8xf32>
    %61 = vector.shape_cast %58 : vector<64x8xf32> to vector<1x64x8xf32>
    tpu.vector_store %arg10[%c0_58, %c0_59, %c0_60], %61 {strides = array<i32>} : memref<1x64x8xf32, #tpu.memory_space<vmem>>, vector<1x64x8xf32>,
    return
  }
  func.func @transform_0(%arg0: i32, %arg1: i32) -> (i32, i32, i32) {
    %c0_i32 = arith.constant 0 : i32
    %c0_i32_0 = arith.constant 0 : i32
    return %arg0, %arg1, %c0_i32 : i32, i32, i32
  }
  func.func @transform_1(%arg0: i32, %arg1: i32) -> (i32, i32, i32) {
    %c8_i32 = arith.constant 8 : i32
    %0 = arith.muli %arg1, %c8_i32 : i32
    %c1_i32 = arith.constant 1 : i32
    %1 = arith.subi %0, %c1_i32 : i32
    %c0_i32 = arith.constant 0 : i32
    %2 = arith.maxsi %1, %c0_i32 : i32
    %c0_i32_0 = arith.constant 0 : i32
    %c0_i32_1 = arith.constant 0 : i32
    return %arg0, %2, %c0_i32_0 : i32, i32, i32
  }
  func.func @transform_2(%arg0: i32, %arg1: i32) -> (i32, i32, i32) {
    %c8_i32 = arith.constant 8 : i32
    %0 = arith.muli %arg1, %c8_i32 : i32
    %c8_i32_0 = arith.constant 8 : i32
    %1 = arith.addi %0, %c8_i32_0 : i32
    %c15_i32 = arith.constant 15 : i32
    %2 = arith.minsi %1, %c15_i32 : i32
    %c0_i32 = arith.constant 0 : i32
    %c0_i32_1 = arith.constant 0 : i32
    return %arg0, %2, %c0_i32 : i32, i32, i32
  }
  func.func @transform_3(%arg0: i32, %arg1: i32) -> (i32, i32, i32) {
    %c0_i32 = arith.constant 0 : i32
    %c0_i32_0 = arith.constant 0 : i32
    %c0_i32_1 = arith.constant 0 : i32
    return %arg0, %c0_i32, %c0_i32_0 : i32, i32, i32
  }
  func.func @transform_4(%arg0: i32, %arg1: i32) -> (i32, i32) {
    %c0_i32 = arith.constant 0 : i32
    %c0_i32_0 = arith.constant 0 : i32
    %c0_i32_1 = arith.constant 0 : i32
    return %c0_i32, %c0_i32_0 : i32, i32
  }
  func.func @transform_5(%arg0: i32, %arg1: i32) -> (i32, i32) {
    %c0_i32 = arith.constant 0 : i32
    %c0_i32_0 = arith.constant 0 : i32
    %c0_i32_1 = arith.constant 0 : i32
    return %c0_i32, %c0_i32_0 : i32, i32
  }
  func.func @transform_6(%arg0: i32, %arg1: i32) -> (i32, i32) {
    %c0_i32 = arith.constant 0 : i32
    %c0_i32_0 = arith.constant 0 : i32
    %c0_i32_1 = arith.constant 0 : i32
    return %c0_i32, %c0_i32_0 : i32, i32
  }
  func.func @transform_7(%arg0: i32, %arg1: i32) -> (i32, i32) {
    %c0_i32 = arith.constant 0 : i32
    %c0_i32_0 = arith.constant 0 : i32
    %c0_i32_1 = arith.constant 0 : i32
    return %c0_i32, %c0_i32_0 : i32, i32
  }
  func.func @transform_8(%arg0: i32, %arg1: i32) -> (i32, i32, i32) {
    %c0_i32 = arith.constant 0 : i32
    %c0_i32_0 = arith.constant 0 : i32
    return %arg0, %arg1, %c0_i32 : i32, i32, i32
  }
}

</mosaic_0001>

<bundles_post_ra>
// kernel: tpu_custom_call.1
= control target key start
LH: loop header
LB: loop body
LE: loop exit
PB: predicated region body
PF: predicated region fallthrough
CT: control target
= control target key end

     0   :  { %s1954_s27 = smov 0   ;;  %s1956_s28 = smov 0   ;;  %s2350_s0 = inlined_call_operand.vmem [shape: f32[2,128,16], index: 0, kind: input, shape index: {}]   ;;  %s2351_s1 = inlined_call_operand.vmem [shape: f32[2,128,16], index: 1, kind: input, shape index: {}]   ;;  %s2352_s2 = inlined_call_operand.vmem [shape: f32[2,128,16], index: 2, kind: input, shape index: {}]   ;;  %s2353_s3 = inlined_call_operand.vmem [shape: f32[2,1,16], index: 3, kind: input, shape index: {}]   ;;  %s2354_s4 = inlined_call_operand.vmem [shape: f32[16,16], index: 4, kind: input, shape index: {}]   ;;  %s2355_s5 = inlined_call_operand.vmem [shape: f32[16,8], index: 5, kind: input, shape index: {}]   ;;  %s2356_s6 = inlined_call_operand.vmem [shape: f32[1,8], index: 6, kind: input, shape index: {}]   ;;  %s2357_s7 = inlined_call_operand.vmem [shape: f32[72,8], index: 7, kind: input, shape index: {}]   ;;  %s2358_s8 = inlined_call_operand.vmem [shape: f32[2,128,8], index: 8, kind: output, shape index: {}]  }
   0x1   :  { %s1958_s29 = smov 0   ;;  %s1960_s30 = smov 0  }
   0x2   :  { %s1962_s9 = smov 0  }
   0x3 LB: > { %s27_s10 = sadd.s32 1, %s1890_s29  ;;  %s30_s11 = sadd.s32 1, %s1894_s30  ;;  %s1898_s9 = sphi %s1962_s9, %s18_s9   ;;  %s1894_s30 = sphi %s1960_s30, %s2363_s30   ;;  %s1890_s29 = sphi %s1958_s29, %s2362_s29   ;;  %s1886_s28 = sphi %s1956_s28, %s2361_s28   ;;  %s1882_s27 = sphi %s1954_s27, %s2360_s27  }
   0x4   : > { %p28_p0 = scmp.ge.s32.totalorder %s27_s10, 2  ;;  %p1592_p1 = scmp.ge.s32.totalorder %s1898_s9, 1 }
   0x5   : > { %p353_p2 = scmp.lt.s32.totalorder %s1898_s9, 5 }
   0x6   : > { %s2365_s10 = smov (%p28_p0, %s27_s10), 0  ;;  %s2367_s11 = smov (!%p28_p0, %s30_s11), %s1894_s30 }
   0x7   : > { %p354_p3 = pnand %p1592_p1, %p353_p2  ;;  %p32_p4 = scmp.ge.s32.totalorder %s2367_s11, 2 }
   0x8   : > { %v487_v0 = vld [vmem:[%s2354_s4] sm:$0xff] (!%p354_p3)  ;;  %v488_v1 = vld [vmem:[%s2354_s4 + $0x8] sm:$0xff] (!%p354_p3)  ;;  %s1593_s16 = sshll.u32 (!%p354_p3), %s1882_s27, 3  ;;  %p423_p5 = scmp.lt.s32.totalorder (!%p354_p3), %s1886_s28, 1  ;;  %vm496_vm0 = vcmask (!%p354_p3), 130048   ;;  %vm868_vm1 = vcmask (!%p354_p3), 64512  }
   0x9   : > { %s2369_s11 = smov (%p32_p4, %s2367_s11), 0  ;;  %357 = sbr.rel (%p354_p3) target bundleno = 938 (0x3aa), region = 52 }
   0xa   : > { %v1757_v2 = vpack.c.bf16 (!%p354_p3), %v488_v1, %v487_v0  ;;  %p425_p6 = scmp.lt.s32.totalorder (!%p354_p3), %s1593_s16, 15  ;;  %s1597_s17 = sadd.s32 (!%p354_p3), 4294967295, %s1593_s16  ;;  %v692_v13 = vld [vmem:[%s2355_s5] sm:$0xff] (!%p354_p3)  ;;  %v693_v14 = vld [vmem:[%s2355_s5 + $0x8] sm:$0xff] (!%p354_p3)  ;;  %vm870_vm2 = vcmask (!%p354_p3), 58368   ;;  %vm1246_vm5 = vcmask (!%p354_p3), 195584  }
   0xb   : > { %p434_p7 = scmp.gt.s32.totalorder (!%p354_p3), %s1597_s17, 0  ;;  %p1598_p8 = scmp.lt.s32.totalorder (!%p354_p3), %s1597_s17, 15  ;;  %v1761_v15 = vpack.c.bf16 (!%p354_p3), %v693_v14, %v692_v13  ;;  %vm1255_vm6 = vcmask (!%p354_p3), 261120   ;;  %vm1264_vm7 = vcmask (!%p354_p3), 326656   ;;  %vm1273_vm8 = vcmask (!%p354_p3), 392192  }
   0xc   : > { %1758 = vmatprep.subr.bf16.mxu0 (!%p354_p3), %v1757_v2  ;;  %s449_s22 = sadd.s32 (!%p354_p3), 8, %s1593_s16  ;;  %p846_p10 = scmp.ne.s32.totalorder (!%p354_p3), %s1882_s27, 0  ;;  %vm1282_vm9 = vcmask (!%p354_p3), 457728   ;;  %vm1291_vm10 = vcmask (!%p354_p3), 523264   ;;  %vm1309_vm11 = vcmask (!%p354_p3), 588800  }
   0xd   : > { %1760 = vmatpush3.bf16.msra.mxu0 (!%p354_p3), %v1757_v2  ;;  %p2002_p9 = scmp.lt.s32.totalorder (!%p354_p3), %s449_s22, 15  ;;  %1762 = vmatprep.subr.bf16.mxu1 (!%p354_p3), %v1761_v15  ;;  %p850_p11 = scmp.ne.s32.totalorder (!%p354_p3), %s1882_s27, 1 }
   0xe   : > { %1764 = vmatpush3.bf16.msra.mxu1 (!%p354_p3), %v1761_v15  ;;  %s1903_s27 = smov (!%p354_p3), 24   ;;  %s1904_s23 = smov (!%p354_p3), 32  }
   0xf   : > { %s1908_s26 = smov (!%p354_p3), 64  }
  0x10   : > { %s2371_s28 = smov (!%p423_p5, %s1886_s28), 1  ;;  %s2373_s17 = smov (!%p434_p7, %s1597_s17), 0 }
  0x11   : > { %s426_s18 = scalar_select %p425_p6, %s1593_s16, 15 }
  0x12   : > { %s1594_s19 = sshll.u32 %s2371_s28, 4  ;;  %s2375_s17 = smov (!%p1598_p8, %s2373_s17), 15 }
  0x13   : > { %s428_s20 = sadd.s32 %s1594_s19, %s426_s18  ;;  %s441_s12 = sadd.s32 %s2375_s17, %s1594_s19 }
  0x14   : > { %s1996_s21 = sshll.u32 %s428_s20, 3  ;;  %s1604_s13 = sshll.u32 %s441_s12, 3 }
  0x15   : > { %s430_s25 = scalar_lea.vmem %s2350_s0, %s1996_s21  ;;  %s443_s18 = scalar_lea.vmem %s2351_s1, %s1604_s13 }
  0x16   : > { %v478_v3 = vld [vmem:[%s430_s25] sm:$0xff]  ;;  %v479_v5 = vld [vmem:[%s430_s25 + $0x8] sm:$0xff]  ;;  %s2377_s22 = smov (!%p2002_p9, %s449_s22), 15  ;;  %v480_v6 = vld [vmem:[%s430_s25 + $0x10] sm:$0xff]  ;;  %s466_s14 = scalar_lea.vmem %s2353_s3, %s2371_s28 }
  0x17   : > { %v477_v4 = vld [vmem:[%s443_s18] sm:$0xff]  ;;  %s2379_s22 = smov (!%p2002_p9, %s2377_s22), 15  ;;  %v481_v7 = vld [vmem:[%s430_s25 + $0x18] sm:$0xff]  ;;  %v483_v9 = vld [vmem:[%s430_s25 + $0x28] sm:$0xff]  ;;  %s1902_s20 = smov 8  }
  0x18   : > { %1693 = vmatprep.mubr.msk.f32.mxu0 %vm496_vm0, %v477_v4  ;;  %s457_s16 = sadd.s32 %s1594_s19, %s2379_s22  ;;  %v482_v8 = vld [vmem:[%s430_s25 + $0x20] sm:$0xff]  ;;  %v484_v10 = vld [vmem:[%s430_s25 + $0x30] sm:$0xff]  ;;  %v485_v11 = vld [vmem:[%s430_s25 + $0x38] sm:$0xff]  ;;  %s1906_s19 = smov 48  }
  0x19   : > { %1694 = vmatmul.mubr.msk.f32.vlgmr.msra.gmra.mrb[0].mxu0 %vm496_vm0, %v478_v3  ;;  %s1610_s17 = sshll.u32 %s457_s16, 3  ;;  %v1614_v16 = vld [vmem:[%s466_s14] ss:$0 sm:$0xff]  ;;  %s1907_s22 = smov 56  }
  0x1a   : > { %1696 = vmatprep.mubr.msk.f32.mxu0 %vm496_vm0, %v479_v5  ;;  %s459_s24 = scalar_lea.vmem %s2352_s2, %s1610_s17  ;;  %s1901_s17 = smov 16  }
  0x1b   : > { %v486_v12 = vld [vmem:[%s459_s24] sm:$0xff]  ;;  %s847_s28 = scalar_select %p846_p10, 1, 0 }
  0x1c   : > { %s851_s16 = scalar_select %p850_p11, 1, 0 }
  0x1d   : > { %1697 = vmatmul.mubr.msk.f32.gmra.mrb[2].mxu0 %vm496_vm0, %v480_v6  ;;  %s1905_s24 = smov 40  }
  0x1e   : > { %1699 = vmatprep.mubr.msk.f32.mxu0 %vm496_vm0, %v481_v7 }
  0x21   : > { %1700 = vmatmul.mubr.msk.f32.gmra.mrb[4].mxu0 %vm496_vm0, %v482_v8 }
  0x22   : > { %1702 = vmatprep.mubr.msk.f32.mxu0 %vm496_vm0, %v483_v9 }
  0x25   : > { %1703 = vmatmul.mubr.msk.f32.gmra.mrb[6].mxu0 %vm496_vm0, %v484_v10 }
  0x26   : > { %1705 = vmatprep.mubr.msk.f32.mxu0 %vm496_vm0, %v485_v11 }
  0x29   : > { %1706 = vmatmul.mubr.msk.f32.gmra.mrb[8].mxu0 %vm496_vm0, %v486_v12 }
  0xec   : > { %v1695_v17 = vpop.f32.mrb[0].mxu0 }
  0xed   : > { %v599_v18 = vadd.f32 %v1695_v17, %v1614_v16  ;;  %v593_v19 = vpop.f32.mrb[1].mxu0 }
  0xee   : > { %v594_v20 = vadd.f32 %v1614_v16, %v593_v19 }
  0xef   : > { %v653_v21 = vmul.f32 0.70710677, %v599_v18  ;;  %v643_v49 = vmul.f32 0.5, %v599_v18 }
  0xf0   : > { %v652_v22 = vmul.f32 0.70710677, %v594_v20  ;;  %v1698_v23 = vpop.f32.mrb[2].mxu0  ;;  %v642_v45 = vmul.f32 0.5, %v594_v20 }
  0xf1   : > { %1840 = verf.f32 %v653_v21  ;;  %v609_v24 = vadd.f32 %v1698_v23, %v1614_v16  ;;  %v603_v25 = vpop.f32.mrb[3].mxu0  ;;  %v1900_v23 = vmov 0.0  }
  0xf2   : > { %1842 = verf.f32 %v652_v22  ;;  %v604_v26 = vadd.f32 %v1614_v16, %v603_v25  ;;  %872 = vst.msk [vmem:[#allocation2 + $0x10] sm:$0xff] %vm868_vm1, %v1900_v23  ;;  %869 = vst.msk [vmem:[#allocation2] sm:$0xff] %vm868_vm1, %v1900_v23  ;;  %v848_v25 = vstv %s847_s28 }
  0xf3   : > { %v655_v27 = vmul.f32 0.70710677, %v609_v24  ;;  %v645_v60 = vmul.f32 0.5, %v609_v24  ;;  %873 = vst.msk [vmem:[#allocation2 + $0x18] sm:$0x3] %vm870_vm2, %v1900_v23  ;;  %vm849_vm3 = vcmp.eq.s32.totalorder %v848_v25, 1 }
  0xf4   : > { %v654_v28 = vmul.f32 0.70710677, %v604_v26  ;;  %v1701_v29 = vpop.f32.mrb[4].mxu0  ;;  %v644_v58 = vmul.f32 0.5, %v604_v26  ;;  %871 = vst.msk [vmem:[#allocation2 + $0x8] sm:$0x3] %vm870_vm2, %v1900_v23 }
  0xf5   : > { %1844 = verf.f32 %v655_v27  ;;  %v619_v30 = vadd.f32 %v1701_v29, %v1614_v16  ;;  %v613_v31 = vpop.f32.mrb[5].mxu0  ;;  %874 = vst.msk [vmem:[#allocation2 + $0x20] sm:$0xff] %vm868_vm1, %v1900_v23  ;;  %876 = vst.msk [vmem:[#allocation2 + $0x30] sm:$0xff] %vm868_vm1, %v1900_v23  ;;  %v1625_v24 = vld [vmem:[%s2356_s6] ss:$0 sm:$0xff] }
  0xf6   : > { %1846 = verf.f32 %v654_v28  ;;  %v614_v32 = vadd.f32 %v1614_v16, %v613_v31  ;;  %875 = vst.msk [vmem:[#allocation2 + $0x28] sm:$0x3] %vm870_vm2, %v1900_v23  ;;  %877 = vst.msk [vmem:[#allocation2 + $0x38] sm:$0x3] %vm870_vm2, %v1900_v23 }
  0xf7   : > { %v657_v33 = vmul.f32 0.70710677, %v619_v30  ;;  %v647_v4 = vmul.f32 0.5, %v619_v30  ;;  %878 = vst.msk [vmem:[#allocation2 + $0x40] sm:$0xff] %vm868_vm1, %v1900_v23  ;;  %880 = vst.msk [vmem:[#allocation2 + $0x50] sm:$0xff] %vm868_vm1, %v1900_v23 }
  0xf8   : > { %v656_v34 = vmul.f32 0.70710677, %v614_v32  ;;  %v1704_v35 = vpop.f32.mrb[6].mxu0  ;;  %v646_v2 = vmul.f32 0.5, %v614_v32  ;;  %879 = vst.msk [vmem:[#allocation2 + $0x48] sm:$0x3] %vm870_vm2, %v1900_v23 }
  0xf9   : > { %1848 = verf.f32 %v657_v33  ;;  %v629_v36 = vadd.f32 %v1704_v35, %v1614_v16  ;;  %v623_v37 = vpop.f32.mrb[7].mxu0  ;;  %881 = vst.msk [vmem:[#allocation2 + $0x58] sm:$0x3] %vm870_vm2, %v1900_v23  ;;  %883 = vst.msk [vmem:[#allocation2 + $0x68] sm:$0x3] %vm870_vm2, %v1900_v23 }
  0xfa   : > { %1850 = verf.f32 %v656_v34  ;;  %v624_v38 = vadd.f32 %v1614_v16, %v623_v37  ;;  %882 = vst.msk [vmem:[#allocation2 + $0x60] sm:$0xff] %vm868_vm1, %v1900_v23  ;;  %884 = vst.msk [vmem:[#allocation2 + $0x70] sm:$0xff] %vm868_vm1, %v1900_v23 }
  0xfb   : > { %v1841_v39 = vpop.eup %1840  ;;  %v659_v40 = vmul.f32 0.70710677, %v629_v36  ;;  %v649_v5 = vmul.f32 0.5, %v629_v36  ;;  %885 = vst.msk [vmem:[#allocation2 + $0x78] sm:$0x3] %vm870_vm2, %v1900_v23 }
  0xfc   : > { %v1843_v41 = vpop.eup %1842  ;;  %v673_v42 = vadd.f32 1.0, %v1841_v39  ;;  %v658_v43 = vmul.f32 0.70710677, %v624_v38  ;;  %v1707_v44 = vpop.f32.mrb[8].mxu0  ;;  %v648_v8 = vmul.f32 0.5, %v624_v38  ;;  %886 = vst.msk [vmem:[#allocation2 + $0x80] sm:$0xff] %vm868_vm1, %v1900_v23 }
  0xfd   : > { %1852 = verf.f32 %v659_v40  ;;  %v672_v46 = vadd.f32 1.0, %v1843_v41  ;;  %v639_v47 = vadd.f32 %v1707_v44, %v1614_v16  ;;  %v633_v48 = vpop.f32.mrb[9].mxu0  ;;  %887 = vst.msk [vmem:[#allocation2 + $0x88] sm:$0x3] %vm870_vm2, %v1900_v23  ;;  %889 = vst.msk [vmem:[#allocation2 + $0x98] sm:$0x3] %vm870_vm2, %v1900_v23  ;;  %v852_v44 = vstv %s851_s16 }
  0xfe   : > { %1854 = verf.f32 %v658_v43  ;;  %v634_v50 = vadd.f32 %v1614_v16, %v633_v48  ;;  %v683_v55 = vmul.f32 %v673_v42, %v643_v49  ;;  %888 = vst.msk [vmem:[#allocation2 + $0x90] sm:$0xff] %vm868_vm1, %v1900_v23  ;;  %vm853_vm4 = vcmp.eq.s32.totalorder %v852_v44, 1 }
  0xff   : > { %v1845_v51 = vpop.eup %1844  ;;  %v682_v52 = vmul.f32 %v672_v46, %v642_v45  ;;  %v661_v53 = vmul.f32 0.70710677, %v639_v47  ;;  %v651_v14 = vmul.f32 0.5, %v639_v47 }
 0x100   : > { %v1847_v54 = vpop.eup %1846  ;;  %v675_v56 = vadd.f32 1.0, %v1845_v51  ;;  %v660_v57 = vmul.f32 0.70710677, %v634_v50  ;;  %v650_v17 = vmul.f32 0.5, %v634_v50 }
 0x101   : > { %v674_v59 = vadd.f32 1.0, %v1847_v54  ;;  %1712 = vmatprep.mubr.msk.f32.mxu1 %vm496_vm0, %v682_v52  ;;  %1856 = verf.f32 %v661_v53 }
 0x102   : > { %1713 = vmatmul.mubr.msk.f32.vlgmr.msra.gmra.mrb[0].mxu1 %vm496_vm0, %v683_v55  ;;  %1858 = verf.f32 %v660_v57  ;;  %v685_v0 = vmul.f32 %v675_v56, %v645_v60 }
 0x103   : > { %v1849_v61 = vpop.eup %1848  ;;  %v684_v62 = vmul.f32 %v674_v59, %v644_v58 }
 0x104   : > { %v1851_v63 = vpop.eup %1850  ;;  %v677_v1 = vadd.f32 1.0, %v1849_v61 }
 0x105   : > { %v676_v3 = vadd.f32 1.0, %v1851_v63  ;;  %1715 = vmatprep.mubr.msk.f32.mxu1 %vm496_vm0, %v684_v62 }
 0x106   : > { %1716 = vmatmul.mubr.msk.f32.gmra.mrb[2].mxu1 %vm496_vm0, %v685_v0  ;;  %v687_v10 = vmul.f32 %v677_v1, %v647_v4  ;;  %v1300_v0 = vld [vmem:[%s2357_s7] sm:$0xff]  ;;  %v1301_v1 = vld [vmem:[%s2357_s7 + $0x8] sm:$0xff]  ;;  %v1302_v4 = vld [vmem:[%s2357_s7 + $0x10] sm:$0xff] }
 0x107   : > { %v1853_v6 = vpop.eup %1852  ;;  %v686_v7 = vmul.f32 %v676_v3, %v646_v2  ;;  %v1765_v2 = vpack.c.bf16 %v1301_v1, %v1300_v0 }
 0x108   : > { %v1855_v9 = vpop.eup %1854  ;;  %v679_v11 = vadd.f32 1.0, %v1853_v6 }
 0x109   : > { %v678_v12 = vadd.f32 1.0, %v1855_v9  ;;  %1718 = vmatprep.mubr.msk.f32.mxu1 %vm496_vm0, %v686_v7  ;;  %1766 = vmatprep.subr.bf16.mxu0 %v1765_v2  ;;  %v1305_v9 = vld [vmem:[%s2357_s7 + $0x28] sm:$0xff] }
 0x10a   : > { %v689_v13 = vmul.f32 %v679_v11, %v649_v5  ;;  %1719 = vmatmul.mubr.msk.f32.gmra.mrb[4].mxu1 %vm496_vm0, %v687_v10  ;;  %1781 = vmatprep.subr.bf16.mxu1 %v1765_v2  ;;  %v1303_v5 = vld [vmem:[%s2357_s7 + $0x18] sm:$0xff] }
 0x10b   : > { %v1857_v15 = vpop.eup %1856  ;;  %v688_v16 = vmul.f32 %v678_v12, %v648_v8  ;;  %1768 = vmatpush3.bf16.msra.mxu0 %v1765_v2  ;;  %v1769_v6 = vpack.c.bf16 %v1303_v5, %v1302_v4  ;;  %1786 = vmatpush3.bf16.msra.mxu1 %v1765_v2  ;;  %v1304_v8 = vld [vmem:[%s2357_s7 + $0x20] sm:$0xff]  ;;  %v1306_v12 = vld [vmem:[%s2357_s7 + $0x30] sm:$0xff] }
 0x10c   : > { %v1859_v18 = vpop.eup %1858  ;;  %v681_v19 = vadd.f32 1.0, %v1857_v15  ;;  %v1773_v10 = vpack.c.bf16 %v1305_v9, %v1304_v8 }
 0x10d   : > { %1721 = vmatprep.mubr.msk.f32.mxu1 %vm496_vm0, %v688_v16  ;;  %v680_v20 = vadd.f32 1.0, %v1859_v18  ;;  %1770 = vmatprep.subr.bf16.mxu0 %v1769_v6 }
 0x10e   : > { %1722 = vmatmul.mubr.msk.f32.gmra.mrb[6].mxu1 %vm496_vm0, %v689_v13  ;;  %v691_v21 = vmul.f32 %v681_v19, %v651_v14  ;;  %1782 = vmatprep.subr.bf16.mxu1 %v1769_v6  ;;  %v1307_v13 = vld [vmem:[%s2357_s7 + $0x38] sm:$0xff] }
 0x10f   : > { %v690_v22 = vmul.f32 %v680_v20, %v650_v17  ;;  %1772 = vmatpush3.bf16.msra.mxu0 %v1769_v6  ;;  %1787 = vmatpush3.bf16.msra.mxu1 %v1769_v6  ;;  %v1777_v14 = vpack.c.bf16 %v1307_v13, %v1306_v12  ;;  %v1308_v17 = vld [vmem:[%s2357_s7 + $0x40] sm:$0xff] }
 0x110   : > { %1774 = vmatprep.subr.bf16.mxu0 %v1773_v10  ;;  %1783 = vmatprep.subr.bf16.mxu1 %v1773_v10 }
 0x111   : > { %1724 = vmatprep.mubr.msk.f32.mxu1 %vm496_vm0, %v690_v22 }
 0x112   : > { %1725 = vmatmul.mubr.msk.f32.gmra.mrb[8].mxu1 %vm496_vm0, %v691_v21 }
 0x113   : > { %1776 = vmatpush3.bf16.msra.mxu0 %v1773_v10  ;;  %1788 = vmatpush3.bf16.msra.mxu1 %v1773_v10 }
 0x114   : > { %1778 = vmatprep.subr.bf16.mxu0 %v1777_v14  ;;  %1784 = vmatprep.subr.bf16.mxu1 %v1777_v14 }
 0x117   : > { %1780 = vmatpush3.bf16.msra.mxu0 %v1777_v14  ;;  %1789 = vmatpush3.bf16.msra.mxu1 %v1777_v14 }
 0x118   : > { %1743 = vmatprep.subr.mxu0 %v1308_v17  ;;  %1785 = vmatprep.subr.mxu1 %v1308_v17 }
 0x11b   : > { %1744 = vmatpush3.msra.mxu0 %v1308_v17  ;;  %1790 = vmatpush3.msra.mxu1 %v1308_v17 }
 0x1d5   : > { %v1714_v26 = vpop.f32.mrb[0].mxu1 }
 0x1d6   : > { %v803_v27 = vadd.f32 %v1714_v26, %v1625_v24  ;;  %v797_v28 = vpop.f32.mrb[1].mxu1 }
 0x1d7   : > { %v798_v29 = vadd.f32 %v1625_v24, %v797_v28 }
 0x1d8   : > { %891 = vst.msk [vmem:[#allocation2 + $0x11] sm:$0xff] %vm868_vm1, %v803_v27 }
 0x1d9   : > { %v858_v30 = vsel %vm849_vm3, %v798_v29, 0.0  ;;  %v1717_v31 = vpop.f32.mrb[2].mxu1 }
 0x1da   : > { %890 = vst.msk [vmem:[#allocation2 + $0x1] sm:$0xff] %vm868_vm1, %v858_v30  ;;  %v813_v32 = vadd.f32 %v1717_v31, %v1625_v24  ;;  %v807_v33 = vpop.f32.mrb[3].mxu1 }
 0x1db   : > { %v808_v34 = vadd.f32 %v1625_v24, %v807_v33 }
 0x1dc   : > { %893 = vst.msk [vmem:[#allocation2 + $0x31] sm:$0xff] %vm868_vm1, %v813_v32 }
 0x1dd   : > { %892 = vst.msk [vmem:[#allocation2 + $0x21] sm:$0xff] %vm868_vm1, %v808_v34  ;;  %v1720_v35 = vpop.f32.mrb[4].mxu1 }
 0x1de   : > { %v823_v36 = vadd.f32 %v1720_v35, %v1625_v24  ;;  %v817_v37 = vpop.f32.mrb[5].mxu1 }
 0x1df   : > { %v818_v38 = vadd.f32 %v1625_v24, %v817_v37  ;;  %v917_v39 = vld [vmem:[#allocation2 + $0x12] sm:$0xff] }
 0x1e0   : > { %v909_v40 = vld [vmem:[#allocation2 + $0x11] sm:$0xff]  ;;  %895 = vst.msk [vmem:[#allocation2 + $0x51] sm:$0xff] %vm868_vm1, %v823_v36  ;;  %1016 = vrot.lane.b32.xlu0 %v917_v39, %s1901_s17 }
 0x1e1   : > { %984 = vrot.lane.b32.xlu1 %v909_v40, %s1902_s20  ;;  %894 = vst.msk [vmem:[#allocation2 + $0x41] sm:$0xff] %vm868_vm1, %v818_v38  ;;  %v1723_v41 = vpop.f32.mrb[6].mxu1  ;;  %v2079_v45 = vld [vmem:[#allocation2 + $0x10] sm:$0xff]  ;;  %v908_v55 = vld [vmem:[#allocation2 + $0x1] sm:$0xff] }
 0x1e2   : > { %v833_v42 = vadd.f32 %v1723_v41, %v1625_v24  ;;  %v827_v43 = vpop.f32.mrb[7].mxu1  ;;  %v916_v56 = vld [vmem:[#allocation2 + $0x2] sm:$0xff] }
 0x1e3   : > { %v828_v46 = vadd.f32 %v1625_v24, %v827_v43  ;;  %v911_v57 = vld [vmem:[#allocation2 + $0x31] sm:$0xff] }
 0x1e4   : > { %1046 = vrot.lane.b32.xlu0 %v2079_v45, %s1903_s27  ;;  %897 = vst.msk [vmem:[#allocation2 + $0x71] sm:$0xff] %vm868_vm1, %v833_v42  ;;  %v919_v59 = vld [vmem:[#allocation2 + $0x32] sm:$0xff]  ;;  %v2139_v3 = vld [vmem:[#allocation2 + $0x20] sm:$0xff] }
 0x1e5   : > { %896 = vst.msk [vmem:[#allocation2 + $0x61] sm:$0xff] %vm868_vm1, %v828_v46  ;;  %v1726_v47 = vpop.f32.mrb[8].mxu1  ;;  %v2113_v61 = vld [vmem:[#allocation2 + $0x30] sm:$0xff]  ;;  %v910_v7 = vld [vmem:[#allocation2 + $0x21] sm:$0xff] }
 0x1e6   : > { %v843_v48 = vadd.f32 %v1726_v47, %v1625_v24  ;;  %v837_v49 = vpop.f32.mrb[9].mxu1  ;;  %v918_v16 = vld [vmem:[#allocation2 + $0x22] sm:$0xff] }
 0x1e7   : > { %v2085_v50 = vld [vmem:[#allocation2 + $0x51] sm:$0xff]  ;;  %v838_v51 = vadd.f32 %v1625_v24, %v837_v49 }
 0x1e8   : > { %1078 = vrot.lane.b32.xlu0 %v909_v40, %s1904_s23  ;;  %992 = vrot.lane.b32.xlu1 %v2085_v50, %s1902_s20  ;;  %v867_v52 = vsel %vm853_vm4, %v843_v48, 0.0  ;;  %v2092_v53 = vld [vmem:[#allocation2 + $0x52] sm:$0xff]  ;;  %v2108_v58 = vld [vmem:[#allocation2 + $0x42] sm:$0xff] }
 0x1e9   : > { %899 = vst.msk [vmem:[#allocation2 + $0x91] sm:$0xff] %vm868_vm1, %v867_v52  ;;  %898 = vst.msk [vmem:[#allocation2 + $0x81] sm:$0xff] %vm868_vm1, %v838_v51  ;;  %v2097_v54 = vld [vmem:[#allocation2 + $0x50] sm:$0xff]  ;;  %v912_v20 = vld [vmem:[#allocation2 + $0x41] sm:$0xff] }
 0x1ea   : > { %v2192_v22 = vld [vmem:[#allocation2 + $0x40] sm:$0xff] }
 0x1eb   : > { %v915_v60 = vld [vmem:[#allocation2 + $0x71] sm:$0xff]  ;;  %v900_v40 = vld [vmem:[#allocation2] sm:$0xff] }
 0x1ec   : > { %1110 = vrot.lane.b32.xlu0 %v917_v39, %s1905_s24  ;;  %1024 = vrot.lane.b32.xlu1 %v2092_v53, %s1901_s17  ;;  %v923_v62 = vld [vmem:[#allocation2 + $0x72] sm:$0xff]  ;;  %v2158_v11 = vld [vmem:[#allocation2 + $0x60] sm:$0xff] }
 0x1ed   : > { %v2121_v63 = vld [vmem:[#allocation2 + $0x70] sm:$0xff]  ;;  %v914_v15 = vld [vmem:[#allocation2 + $0x61] sm:$0xff] }
 0x1ee   : > { %v922_v18 = vld [vmem:[#allocation2 + $0x62] sm:$0xff] }
 0x1f0   : > { %1054 = vrot.lane.b32.xlu1 %v2097_v54, %s1903_s27  ;;  %982 = vrot.lane.b32.xlu0 %v908_v55, %s1902_s20  ;;  %v932_v19 = vld [vmem:[#allocation2 + $0x80] sm:$0xff]  ;;  %v957_v24 = vld [vmem:[#allocation2 + $0x90] sm:$0xff] }
 0x1f1   : > { %v940_v21 = vld [vmem:[#allocation2 + $0x81] sm:$0xff]  ;;  %v965_v30 = vld [vmem:[#allocation2 + $0x91] sm:$0xff] }
 0x1f2   : > { %v948_v23 = vld [vmem:[#allocation2 + $0x82] sm:$0xff]  ;;  %v973_v37 = vld [vmem:[#allocation2 + $0x92] sm:$0xff] }
 0x1f4   : > { %1086 = vrot.lane.b32.xlu1 %v2085_v50, %s1904_s23  ;;  %1014 = vrot.lane.b32.xlu0 %v916_v56, %s1901_s17 }
 0x1f8   : > { %1118 = vrot.lane.b32.xlu1 %v2092_v53, %s1905_s24  ;;  %988 = vrot.lane.b32.xlu0 %v911_v57, %s1902_s20 }
 0x1fc   : > { %1022 = vrot.lane.b32.xlu1 %v2108_v58, %s1901_s17  ;;  %1020 = vrot.lane.b32.xlu0 %v919_v59, %s1901_s17 }
 0x200   : > { %996 = vrot.lane.b32.xlu1 %v915_v60, %s1902_s20  ;;  %1050 = vrot.lane.b32.xlu0 %v2113_v61, %s1903_s27 }
 0x204   : > { %1028 = vrot.lane.b32.xlu1 %v923_v62, %s1901_s17  ;;  %1144 = vrot.lane.b32.xlu0 %v2113_v61, %s1906_s19 }
 0x208   : > { %1058 = vrot.lane.b32.xlu1 %v2121_v63, %s1903_s27  ;;  %1082 = vrot.lane.b32.xlu0 %v911_v57, %s1904_s23 }
 0x20c   : > { %1152 = vrot.lane.b32.xlu1 %v2121_v63, %s1906_s19  ;;  %1176 = vrot.lane.b32.xlu0 %v911_v57, %s1907_s22 }
 0x210   : > { %1090 = vrot.lane.b32.xlu1 %v915_v60, %s1904_s23  ;;  %1114 = vrot.lane.b32.xlu0 %v919_v59, %s1905_s24 }
 0x214   : > { %1184 = vrot.lane.b32.xlu1 %v915_v60, %s1907_s22  ;;  %1208 = vrot.lane.b32.xlu0 %v919_v59, %s1908_s26 }
 0x218   : > { %1122 = vrot.lane.b32.xlu1 %v923_v62, %s1905_s24  ;;  %1048 = vrot.lane.b32.xlu0 %v2139_v3, %s1903_s27 }
 0x21c   : > { %1216 = vrot.lane.b32.xlu1 %v923_v62, %s1908_s26  ;;  %986 = vrot.lane.b32.xlu0 %v910_v7, %s1902_s20 }
 0x220   : > { %1056 = vrot.lane.b32.xlu1 %v2158_v11, %s1903_s27  ;;  %1080 = vrot.lane.b32.xlu0 %v910_v7, %s1904_s23 }
 0x224   : > { %994 = vrot.lane.b32.xlu1 %v914_v15, %s1902_s20  ;;  %1018 = vrot.lane.b32.xlu0 %v918_v16, %s1901_s17 }
 0x228   : > { %1088 = vrot.lane.b32.xlu1 %v914_v15, %s1904_s23  ;;  %1112 = vrot.lane.b32.xlu0 %v918_v16, %s1905_s24 }
 0x22c   : > { %1026 = vrot.lane.b32.xlu1 %v922_v18, %s1901_s17  ;;  %1142 = vrot.lane.b32.xlu0 %v2139_v3, %s1906_s19 }
 0x230   : > { %1120 = vrot.lane.b32.xlu1 %v922_v18, %s1905_s24  ;;  %1174 = vrot.lane.b32.xlu0 %v910_v7, %s1907_s22 }
 0x234   : > { %1150 = vrot.lane.b32.xlu1 %v2158_v11, %s1906_s19  ;;  %1206 = vrot.lane.b32.xlu0 %v918_v16, %s1908_s26 }
 0x238   : > { %1182 = vrot.lane.b32.xlu1 %v914_v15, %s1907_s22  ;;  %1148 = vrot.lane.b32.xlu0 %v2097_v54, %s1906_s19 }
 0x23c   : > { %1214 = vrot.lane.b32.xlu1 %v922_v18, %s1908_s26  ;;  %1180 = vrot.lane.b32.xlu0 %v2085_v50, %s1907_s22 }
 0x240   : > { %1060 = vrot.lane.b32.xlu1 %v932_v19, %s1903_s27  ;;  %990 = vrot.lane.b32.xlu0 %v912_v20, %s1902_s20 }
 0x244   : > { %1092 = vrot.lane.b32.xlu1 %v940_v21, %s1904_s23  ;;  %1052 = vrot.lane.b32.xlu0 %v2192_v22, %s1903_s27  ;;  %s475_s27 = scalar_lea.vmem %s2358_s8, %s1996_s21 }
 0x248   : > { %1124 = vrot.lane.b32.xlu1 %v948_v23, %s1905_s24  ;;  %1084 = vrot.lane.b32.xlu0 %v912_v20, %s1904_s23 }
 0x24c   : > { %1154 = vrot.lane.b32.xlu1 %v932_v19, %s1906_s19  ;;  %1116 = vrot.lane.b32.xlu0 %v2108_v58, %s1905_s24 }
 0x250   : > { %1156 = vrot.lane.b32.xlu1 %v957_v24, %s1906_s19  ;;  %1146 = vrot.lane.b32.xlu0 %v2192_v22, %s1906_s19 }
 0x252   : > { %v1017_v25 = vpop.permute.xlu0 %1016 }
 0x253   : > { %v985_v26 = vpop.permute.xlu1 %984 }
 0x254   : > { %v1231_v27 = vsel %vm868_vm1, %v2079_v45, %v985_v26  ;;  %1186 = vrot.lane.b32.xlu1 %v940_v21, %s1907_s22  ;;  %1178 = vrot.lane.b32.xlu0 %v912_v20, %s1907_s22 }
 0x255   : > { %v2210_v28 = vsel %vm496_vm0, %v1231_v27, %v1017_v25 }
 0x256   : > { %v1047_v29 = vpop.permute.xlu0 %1046 }
 0x258   : > { %1188 = vrot.lane.b32.xlu1 %v965_v30, %s1907_s22  ;;  %1210 = vrot.lane.b32.xlu0 %v2108_v58, %s1908_s26 }
 0x25a   : > { %v1079_v31 = vpop.permute.xlu0 %1078  ;;  %v993_v32 = vpop.permute.xlu1 %992 }
 0x25b   : > { %v1235_v33 = vsel %vm868_vm1, %v2097_v54, %v993_v32 }
 0x25c   : > { %1218 = vrot.lane.b32.xlu1 %v948_v23, %s1908_s26  ;;  %1212 = vrot.lane.b32.xlu0 %v2092_v53, %s1908_s26 }
 0x25e   : > { %v1111_v34 = vpop.permute.xlu0 %1110  ;;  %v1025_v35 = vpop.permute.xlu1 %1024 }
 0x25f   : > { %v2221_v36 = vsel %vm496_vm0, %v1235_v33, %v1025_v35 }
 0x260   : > { %1220 = vrot.lane.b32.xlu1 %v973_v37, %s1908_s26 }
 0x262   : > { %v2224_v38 = vpop.permute.xlu1 %1054  ;;  %v983_v39 = vpop.permute.xlu0 %982 }
 0x263   : > { %v1230_v41 = vsel %vm868_vm1, %v900_v40, %v983_v39 }
 0x266   : > { %v2227_v42 = vpop.permute.xlu1 %1086  ;;  %v1015_v43 = vpop.permute.xlu0 %1014 }
 0x267   : > { %v1238_v44 = vsel %vm496_vm0, %v1230_v41, %v1015_v43 }
 0x268   : > { %v1247_v45 = vsel %vm1246_vm5, %v1238_v44, %v1047_v29 }
 0x269   : > { %v1256_v46 = vsel %vm1255_vm6, %v1247_v45, %v1079_v31 }
 0x26a   : > { %v2232_v47 = vpop.permute.xlu1 %1118  ;;  %v989_v48 = vpop.permute.xlu0 %988  ;;  %v1265_v49 = vsel %vm1264_vm7, %v1256_v46, %v1111_v34 }
 0x26b   : > { %v1233_v50 = vsel %vm868_vm1, %v2113_v61, %v989_v48 }
 0x26e   : > { %v2237_v51 = vpop.permute.xlu1 %1022  ;;  %v1021_v52 = vpop.permute.xlu0 %1020 }
 0x26f   : > { %v2240_v53 = vsel %vm496_vm0, %v1233_v50, %v1021_v52 }
 0x272   : > { %v997_v54 = vpop.permute.xlu1 %996  ;;  %v1051_v55 = vpop.permute.xlu0 %1050 }
 0x273   : > { %v1237_v56 = vsel %vm868_vm1, %v2121_v63, %v997_v54 }
 0x276   : > { %v1029_v57 = vpop.permute.xlu1 %1028  ;;  %v1145_v58 = vpop.permute.xlu0 %1144 }
 0x277   : > { %v2245_v59 = vsel %vm496_vm0, %v1237_v56, %v1029_v57 }
 0x27a   : > { %v1059_v60 = vpop.permute.xlu1 %1058  ;;  %v1083_v62 = vpop.permute.xlu0 %1082 }
 0x27e   : > { %v1153_v0 = vpop.permute.xlu1 %1152  ;;  %v1177_v61 = vpop.permute.xlu0 %1176 }
 0x282   : > { %v1091_v1 = vpop.permute.xlu1 %1090  ;;  %v1115_v2 = vpop.permute.xlu0 %1114 }
 0x286   : > { %v1185_v4 = vpop.permute.xlu1 %1184  ;;  %v1209_v5 = vpop.permute.xlu0 %1208 }
 0x28a   : > { %v1123_v6 = vpop.permute.xlu1 %1122  ;;  %v1049_v7 = vpop.permute.xlu0 %1048 }
 0x28b   : > { %v1248_v21 = vsel %vm1246_vm5, %v2210_v28, %v1049_v7 }
 0x28e   : > { %v2247_v8 = vpop.permute.xlu1 %1216  ;;  %v987_v9 = vpop.permute.xlu0 %986 }
 0x28f   : > { %v1232_v12 = vsel %vm868_vm1, %v2139_v3, %v987_v9 }
 0x292   : > { %v1057_v10 = vpop.permute.xlu1 %1056  ;;  %v1081_v63 = vpop.permute.xlu0 %1080 }
 0x293   : > { %v1257_v23 = vsel %vm1255_vm6, %v1248_v21, %v1081_v63  ;;  %v1252_v48 = vsel %vm1246_vm5, %v2221_v36, %v1057_v10 }
 0x296   : > { %v995_v13 = vpop.permute.xlu1 %994  ;;  %v1019_v14 = vpop.permute.xlu0 %1018 }
 0x297   : > { %v1240_v15 = vsel %vm496_vm0, %v1232_v12, %v1019_v14  ;;  %v1236_v3 = vsel %vm868_vm1, %v2158_v11, %v995_v13 }
 0x298   : > { %v1249_v16 = vsel %vm1246_vm5, %v1240_v15, %v1051_v55 }
 0x299   : > { %v1258_v17 = vsel %vm1255_vm6, %v1249_v16, %v1083_v62 }
 0x29a   : > { %v1089_v18 = vpop.permute.xlu1 %1088  ;;  %v1113_v19 = vpop.permute.xlu0 %1112  ;;  %v2255_v20 = vsel %vm1264_vm7, %v1258_v17, %v1115_v2 }
 0x29b   : > { %v1266_v26 = vsel %vm1264_vm7, %v1257_v23, %v1113_v19 }
 0x29c   : > { %v1275_v31 = vsel %vm1273_vm8, %v1266_v26, %v1145_v58 }
 0x29d   : > { %v1284_v11 = vsel %vm1282_vm9, %v1275_v31, %v1177_v61 }
 0x29e   : > { %v1027_v24 = vpop.permute.xlu1 %1026  ;;  %v1143_v25 = vpop.permute.xlu0 %1142  ;;  %v1293_v41 = vsel %vm1291_vm10, %v1284_v11, %v1209_v5 }
 0x29f   : > { %v1244_v27 = vsel %vm496_vm0, %v1236_v3, %v1027_v24  ;;  %v1274_v34 = vsel %vm1273_vm8, %v1265_v49, %v1143_v25  ;;  %v1261_v49 = vsel %vm1255_vm6, %v1252_v48, %v1089_v18 }
 0x2a0   : > { %v1253_v29 = vsel %vm1246_vm5, %v1244_v27, %v1059_v60 }
 0x2a1   : > { %v1262_v30 = vsel %vm1255_vm6, %v1253_v29, %v1091_v1 }
 0x2a2   : > { %v1121_v28 = vpop.permute.xlu1 %1120  ;;  %v1175_v32 = vpop.permute.xlu0 %1174  ;;  %v1271_v33 = vsel %vm1264_vm7, %v1262_v30, %v1123_v6 }
 0x2a3   : > { %v1283_v35 = vsel %vm1282_vm9, %v1274_v34, %v1175_v32  ;;  %v1270_v50 = vsel %vm1264_vm7, %v1261_v49, %v1121_v28 }
 0x2a4   : > { %v1279_v57 = vsel %vm1273_vm8, %v1270_v50, %v1153_v0 }
 0x2a5   : > { %v1288_v1 = vsel %vm1282_vm9, %v1279_v57, %v1185_v4 }
 0x2a6   : > { %v1151_v37 = vpop.permute.xlu1 %1150  ;;  %v1207_v39 = vpop.permute.xlu0 %1206 }
 0x2a7   : > { %v1292_v40 = vsel %vm1291_vm10, %v1283_v35, %v1207_v39 }
 0x2a8   : > { %1745 = vmatprep.mubr.msk.f32.mxu0 %vm1309_vm11, %v1292_v40 }
 0x2a9   : > { %1746 = vmatmul.mubr.msk.f32.vlgmr.msra.gmra.mrb[10].mxu0 %vm1309_vm11, %v1293_v41 }
 0x2aa   : > { %v1183_v43 = vpop.permute.xlu1 %1182  ;;  %v1149_v44 = vpop.permute.xlu0 %1148 }
 0x2ae   : > { %v1215_v45 = vpop.permute.xlu1 %1214  ;;  %v1181_v46 = vpop.permute.xlu0 %1180 }
 0x2b2   : > { %v1061_v52 = vpop.permute.xlu1 %1060  ;;  %v991_v54 = vpop.permute.xlu0 %990 }
 0x2b3   : > { %v1234_v55 = vsel %vm868_vm1, %v2192_v22, %v991_v54  ;;  %v1254_v18 = vsel %vm1246_vm5, %v2245_v59, %v1061_v52 }
 0x2b4   : > { %v1242_v56 = vsel %vm496_vm0, %v1234_v55, %v2237_v51 }
 0x2b5   : > { %v1251_v58 = vsel %vm1246_vm5, %v1242_v56, %v2224_v38  ;;  %v1297_v38 = vsel %vm1291_vm10, %v1288_v1, %v2247_v8 }
 0x2b6   : > { %v1260_v36 = vsel %vm1255_vm6, %v1251_v58, %v2227_v42  ;;  %v1093_v60 = vpop.permute.xlu1 %1092  ;;  %v1053_v62 = vpop.permute.xlu0 %1052 }
 0x2b7   : > { %v1269_v61 = vsel %vm1264_vm7, %v1260_v36, %v2232_v47  ;;  %v1250_v4 = vsel %vm1246_vm5, %v2240_v53, %v1053_v62  ;;  %v1263_v3 = vsel %vm1255_vm6, %v1254_v18, %v1093_v60 }
 0x2b8   : > { %v1278_v22 = vsel %vm1273_vm8, %v1269_v61, %v1151_v37 }
 0x2b9   : > { %v1287_v2 = vsel %vm1282_vm9, %v1278_v22, %v1183_v43 }
 0x2ba   : > { %v1125_v51 = vpop.permute.xlu1 %1124  ;;  %v1085_v5 = vpop.permute.xlu0 %1084  ;;  %v1296_v0 = vsel %vm1291_vm10, %v1287_v2, %v1215_v45 }
 0x2bb   : > { %1751 = vmatprep.mubr.msk.f32.mxu1 %vm1309_vm11, %v1296_v0  ;;  %v1259_v63 = vsel %vm1255_vm6, %v1250_v4, %v1085_v5  ;;  %v1272_v26 = vsel %vm1264_vm7, %v1263_v3, %v1125_v51 }
 0x2bc   : > { %1752 = vmatmul.mubr.msk.f32.vlgmr.msra.gmra.mrb[10].mxu1 %vm1309_vm11, %v1297_v38 }
 0x2be   : > { %v1155_v42 = vpop.permute.xlu1 %1154  ;;  %v1117_v6 = vpop.permute.xlu0 %1116 }
 0x2bf   : > { %v1268_v12 = vsel %vm1264_vm7, %v1259_v63, %v1117_v6  ;;  %v1280_v53 = vsel %vm1273_vm8, %v1271_v33, %v1155_v42 }
 0x2c0   : > { %v1277_v16 = vsel %vm1273_vm8, %v1268_v12, %v1149_v44 }
 0x2c2   : > { %v1157_v47 = vpop.permute.xlu1 %1156  ;;  %v1147_v7 = vpop.permute.xlu0 %1146 }
 0x2c3   : > { %v1276_v13 = vsel %vm1273_vm8, %v2255_v20, %v1147_v7  ;;  %v1286_v20 = vsel %vm1282_vm9, %v1277_v16, %v1181_v46  ;;  %v1281_v59 = vsel %vm1273_vm8, %v1272_v26, %v1157_v47 }
 0x2c6   : > { %v1187_v9 = vpop.permute.xlu1 %1186  ;;  %v1179_v10 = vpop.permute.xlu0 %1178 }
 0x2c7   : > { %v1285_v8 = vsel %vm1282_vm9, %v1276_v13, %v1179_v10  ;;  %v1289_v19 = vsel %vm1282_vm9, %v1280_v53, %v1187_v9 }
 0x2ca   : > { %v1189_v14 = vpop.permute.xlu1 %1188  ;;  %v1211_v15 = vpop.permute.xlu0 %1210 }
 0x2cb   : > { %v1294_v17 = vsel %vm1291_vm10, %v1285_v8, %v1211_v15  ;;  %v1290_v27 = vsel %vm1282_vm9, %v1281_v59, %v1189_v14 }
 0x2cc   : > { %1748 = vmatprep.mubr.msk.f32.mxu0 %vm1309_vm11, %v1294_v17 }
 0x2ce   : > { %v1219_v21 = vpop.permute.xlu1 %1218  ;;  %v1213_v23 = vpop.permute.xlu0 %1212 }
 0x2cf   : > { %v1298_v24 = vsel %vm1291_vm10, %v1289_v19, %v1219_v21  ;;  %v1295_v25 = vsel %vm1291_vm10, %v1286_v20, %v1213_v23 }
 0x2d0   : > { %1749 = vmatmul.mubr.msk.f32.gmra.mrb[12].mxu0 %vm1309_vm11, %v1295_v25  ;;  %1754 = vmatprep.mubr.msk.f32.mxu1 %vm1309_vm11, %v1298_v24 }
 0x2d2   : > { %v1221_v29 = vpop.permute.xlu1 %1220 }
 0x2d3   : > { %v1299_v30 = vsel %vm1291_vm10, %v1290_v27, %v1221_v29 }
 0x2d4   : > { %1755 = vmatmul.mubr.msk.f32.gmra.mrb[12].mxu1 %vm1309_vm11, %v1299_v30 }
 0x37c   : > { %v1747_v31 = vpop.f32.mrb[10].mxu0 }
 0x37d   : > { %1440 = vst.msk [vmem:[%s475_s27 + $0x8] sm:$0xff] %vm868_vm1, %v1747_v31  ;;  %v1400_v28 = vpop.f32.mrb[11].mxu0 }
 0x37e   : > { %1439 = vst.msk [vmem:[%s475_s27] sm:$0xff] %vm868_vm1, %v1400_v28 }
 0x38f   : > { %v1753_v32 = vpop.f32.mrb[10].mxu1 }
 0x390   : > { %1444 = vst.msk [vmem:[%s475_s27 + $0x28] sm:$0xff] %vm868_vm1, %v1753_v32  ;;  %v1420_v33 = vpop.f32.mrb[11].mxu1 }
 0x391   : > { %1443 = vst.msk [vmem:[%s475_s27 + $0x20] sm:$0xff] %vm868_vm1, %v1420_v33 }
 0x3a3   : > { %v1750_v11 = vpop.f32.mrb[12].mxu0 }
 0x3a4   : > { %1442 = vst.msk [vmem:[%s475_s27 + $0x18] sm:$0xff] %vm868_vm1, %v1750_v11  ;;  %v1410_v34 = vpop.f32.mrb[13].mxu0 }
 0x3a5   : > { %1441 = vst.msk [vmem:[%s475_s27 + $0x10] sm:$0xff] %vm868_vm1, %v1410_v34 }
 0x3a7   : > { %v1756_v35 = vpop.f32.mrb[12].mxu1 }
 0x3a8   : > { %1446 = vst.msk [vmem:[%s475_s27 + $0x38] sm:$0xff] %vm868_vm1, %v1756_v35  ;;  %v1430_v37 = vpop.f32.mrb[13].mxu1 }
 0x3a9   : > { %1445 = vst.msk [vmem:[%s475_s27 + $0x30] sm:$0xff] %vm868_vm1, %v1430_v37 }
 0x3aa PF: > { %s18_s9 = sadd.s32 1, %s1898_s9   ;;  %s2360_s27 = smov %s1890_s29 }
 0x3ab   : > { %p15_p12 = scmp.ge.s32.totalorder %s18_s9, 6   ;;  %s2361_s28 = smov %s1894_s30 }
 0x3ac   : > { %s2362_s29 = smov %s2365_s10  ;;  %s2363_s30 = smov %s2369_s11 }
 0x3ad   :  { %17 = sbr.rel (!%p15_p12) target bundleno = 3 (0x3), region = 93 }

</bundles_post_ra>
